<compile_context>
chip_gen: v7x
topology: tpu7x:2x2x1
jax: 0.10.0
libtpu: 0.0.40
codegen_flags: <defaults>
</compile_context>

<pallas_src>
import functools

import jax
import jax.numpy as jnp
from jax.experimental import pallas as pl
from jax.experimental.pallas import tpu as pltpu


# ----------------------------------------------------------------------------
# VMEM planning
# ----------------------------------------------------------------------------
_VMEM_CAP = None


def _tpu_vmem_capacity():
    """Physical VMEM bytes per TensorCore (64 MiB v7x, 128 MiB v5e/v6e)."""
    global _VMEM_CAP
    if _VMEM_CAP is None:
        cap = 0
        try:
            cap = int(pltpu.get_tpu_info().vmem_capacity_bytes)
        except Exception:
            cap = 0
        _VMEM_CAP = cap if cap > 0 else (64 << 20)  # conservative default = v7x
    return _VMEM_CAP


def _choose_tile(c, m, itemsize, budget):
    """Largest 128-multiple pixel tile whose double-buffered in+out blocks
    plus f32 temporaries fit the byte budget."""
    per_col = c * (4 * itemsize + 8)        # 2x(in+out) buffers + ~2 f32 temps
    tm = (budget // max(per_col, 1)) // 128 * 128
    if m <= 128 or tm >= m:
        return m                            # one full-width tile per image
    return int(max(128, tm))


def _plan(c, m, itemsize, force_two_pass, tile_override):
    cap = _tpu_vmem_capacity()
    vmem_limit = int(min((cap * 3) // 5, cap - (4 << 20)))   # explicit scoped limit
    budget = cap // 4                                        # bytes for our blocks
    fused_bytes = c * m * (4 * itemsize + 12)                # in+out (x2) + f32 temps
    use_fused = (not force_two_pass) and fused_bytes <= budget
    tm = int(tile_override) if tile_override is not None else _choose_tile(
        c, m, itemsize, budget)
    return use_fused, tm, vmem_limit


# ----------------------------------------------------------------------------
# Fused single-pass kernel: one image per grid step, everything in VMEM.
# ----------------------------------------------------------------------------
def _scse_fused_kernel(x_ref, wsq_ref, wex_ref, ws_ref, o_ref, *, inv_hw, use_dot):
    x = x_ref[0]                                     # (C, M), input dtype
    xf = x.astype(jnp.float32)
    # cSE: global average pool -> squeeze -> excite -> sigmoid
    z = jnp.sum(xf, axis=1, keepdims=True) * inv_hw                       # (C, 1)
    hsq = jnp.dot(wsq_ref[...], z, preferred_element_type=jnp.float32)    # (C//2, 1)
    exc = jnp.dot(wex_ref[...], hsq, preferred_element_type=jnp.float32)  # (C, 1)
    g = jax.nn.sigmoid(exc)                                               # (C, 1)
    # sSE: 1x1 conv over channels -> sigmoid
    if use_dot:   # ws_ref is (1, C): push the C-reduction onto the MXU
        q = jnp.dot(ws_ref[...].astype(x.dtype), x,
                    preferred_element_type=jnp.float32)                   # (1, M)
    else:         # ws_ref is (C, 1): VPU multiply + reduce
        q = jnp.sum(xf * ws_ref[...], axis=0, keepdims=True)              # (1, M)
    q = jax.nn.sigmoid(q)
    # out = U*g + U*q
    o_ref[0] = (xf * (g + q)).astype(o_ref.dtype)


def _scse_fused(x_flat, w_sq, w_ex, w_s, vmem_limit):
    n, c, m = x_flat.shape
    use_dot = c >= 64
    ws = w_s.reshape(1, c) if use_dot else w_s
    kernel = functools.partial(_scse_fused_kernel, inv_hw=1.0 / m, use_dot=use_dot)
    return pl.pallas_call(
        kernel,
        out_shape=jax.ShapeDtypeStruct((n, c, m), x_flat.dtype),
        grid=(n,),
        in_specs=[
            pl.BlockSpec((1, c, m), lambda i: (i, 0, 0)),
            pl.BlockSpec((c // 2, c), lambda i: (0, 0)),   # resident weight
            pl.BlockSpec((c, c // 2), lambda i: (0, 0)),   # resident weight
            pl.BlockSpec(ws.shape, lambda i: (0, 0)),      # resident weight
        ],
        out_specs=pl.BlockSpec((1, c, m), lambda i: (i, 0, 0)),
        compiler_params=pltpu.CompilerParams(
            dimension_semantics=("parallel",),
            vmem_limit_bytes=vmem_limit),
    )(x_flat, w_sq, w_ex, ws)


# ----------------------------------------------------------------------------
# Two-pass fallback, pass 1: per-(image, pixel-tile) partial channel sums.
# Fully "parallel" grid (no loop-carried accumulator) so both v7x TensorCores
# are used even at batch 1. Ragged last tile is masked in-kernel.
# ----------------------------------------------------------------------------
def _partial_sum_kernel(x_ref, ps_ref, *, tm, m):
    x = x_ref[0]                                     # (C, TM)
    xf = x.astype(jnp.float32)
    if m % tm:                                       # mask out-of-range pixels
        j = pl.program_id(1)
        lane = jax.lax.broadcasted_iota(jnp.int32, xf.shape, dimension=1)
        xf = jnp.where(j * tm + lane < m, xf, 0.0)
    ps_ref[0] = jnp.sum(xf, axis=1, keepdims=True)   # (C, 1)


def _cse_partial_sums(x_flat, tm, vmem_limit):
    n, c, m = x_flat.shape
    t = -(-m // tm)
    kernel = functools.partial(_partial_sum_kernel, tm=tm, m=m)
    return pl.pallas_call(
        kernel,
        out_shape=jax.ShapeDtypeStruct((n * t, c, 1), jnp.float32),
        grid=(n, t),
        in_specs=[pl.BlockSpec((1, c, tm), lambda i, j: (i, 0, j))],
        out_specs=pl.BlockSpec((1, c, 1), lambda i, j: (i * t + j, 0, 0)),
        compiler_params=pltpu.CompilerParams(
            dimension_semantics=("parallel", "parallel"),
            vmem_limit_bytes=vmem_limit),
    )(x_flat)


# ----------------------------------------------------------------------------
# Two-pass fallback, pass 2: spatial gate + apply both gates (fused).
#   out = U * (g + sigmoid(sum_c w_s[c] * U[c, :]))
# ----------------------------------------------------------------------------
def _apply_gates_kernel(x_ref, g_ref, ws_ref, o_ref, *, use_dot):
    x = x_ref[0]                                     # (C, TM)
    xf = x.astype(jnp.float32)
    g = g_ref[0]                                     # (C, 1) f32
    if use_dot:
        q = jnp.dot(ws_ref[...].astype(x.dtype), x,
                    preferred_element_type=jnp.float32)           # (1, TM)
    else:
        q = jnp.sum(xf * ws_ref[...], axis=0, keepdims=True)      # (1, TM)
    q = jax.nn.sigmoid(q)
    o_ref[0] = (xf * (g + q)).astype(o_ref.dtype)


def _apply_gates(x_flat, gate, w_s, tm, vmem_limit):
    n, c, m = x_flat.shape
    t = -(-m // tm)
    use_dot = c >= 64
    ws = w_s.reshape(1, c) if use_dot else w_s
    kernel = functools.partial(_apply_gates_kernel, use_dot=use_dot)
    return pl.pallas_call(
        kernel,
        out_shape=jax.ShapeDtypeStruct((n, c, m), x_flat.dtype),
        grid=(n, t),
        in_specs=[
            pl.BlockSpec((1, c, tm), lambda i, j: (i, 0, j)),
            pl.BlockSpec((1, c, 1), lambda i, j: (i, 0, 0)),
            pl.BlockSpec(ws.shape, lambda i, j: (0, 0)),
        ],
        out_specs=pl.BlockSpec((1, c, tm), lambda i, j: (i, 0, j)),
        compiler_params=pltpu.CompilerParams(
            dimension_semantics=("parallel", "parallel"),
            vmem_limit_bytes=vmem_limit),
    )(x_flat, gate, w_s)


def _scse_two_pass(x_flat, w_sq, w_ex, w_s, tm, vmem_limit):
    n, c, m = x_flat.shape
    t = -(-m // tm)
    partial = _cse_partial_sums(x_flat, tm, vmem_limit)           # (N*T, C, 1) f32
    # Tiny per-image gate MLP (a few C^2 FLOPs) finished in XLA in f32.
    sums = partial.reshape(n, t, c).sum(axis=1)                   # (N, C)
    z = sums * (1.0 / m)
    hsq = z @ w_sq.T                                              # (N, C//2)
    exc = hsq @ w_ex.T                                            # (N, C)
    gate = jax.nn.sigmoid(exc)[:, :, None]                        # (N, C, 1) f32
    return _apply_gates(x_flat, gate, w_s, tm, vmem_limit)


# ----------------------------------------------------------------------------
# Parameters (deterministic, synthetic). Conv2d 1x1 weights kept in the torch
# output-major layout, squeezed to 2D. Weights stay f32.
# ----------------------------------------------------------------------------
def init_scse_params(key, c):
    k1, k2, k3 = jax.random.split(key, 3)
    return {
        "w_sq": 0.3 * jax.random.normal(k1, (c // 2, c), jnp.float32),  # Conv_Squeeze
        "w_ex": 0.3 * jax.random.normal(k2, (c, c // 2), jnp.float32),  # Conv_Excitation
        "w_s": 0.3 * jax.random.normal(k3, (c, 1), jnp.float32),        # sSE Conv1x1
    }


# ----------------------------------------------------------------------------
# scSE forward (NCHW in, NCHW out, output dtype == input dtype).
# ----------------------------------------------------------------------------
@functools.partial(jax.jit, static_argnames=("force_two_pass", "tile_override"))
def scse_forward(x_nchw, params, *, force_two_pass=False, tile_override=None):
    n, c, h, w = x_nchw.shape
    m = h * w
    x = x_nchw.reshape(n, c, m)                      # free reshape, lane-dense pixels
    use_fused, tm, vmem_limit = _plan(
        c, m, x.dtype.itemsize, force_two_pass, tile_override)
    if use_fused:
        out = _scse_fused(x, params["w_sq"], params["w_ex"], params["w_s"],
                          vmem_limit)
    else:
        out = _scse_two_pass(x, params["w_sq"], params["w_ex"], params["w_s"],
                             tm, vmem_limit)
    return out.reshape(n, c, h, w)


def scse_reference(x, params):
    xf = x.astype(jnp.float32)
    z = jnp.mean(xf, axis=(2, 3))                                 # (N, C)
    hsq = jnp.einsum("oc,nc->no", params["w_sq"], z)              # (N, C//2)
    exc = jnp.einsum("oc,nc->no", params["w_ex"], hsq)            # (N, C)
    cgate = jax.nn.sigmoid(exc)[:, :, None, None]
    q = jnp.einsum("c,nchw->nhw", params["w_s"][:, 0], xf)
    sgate = jax.nn.sigmoid(q)[:, None, :, :]
    return xf * cgate + xf * sgate


if __name__ == "__main__":
    key = jax.random.PRNGKey(0)
    kx, kp, kx2, kp2 = jax.random.split(key, 4)

    # 1) fused single-pass path (f32)
    N, C, H, W = 2, 4, 16, 16
    x = jax.random.normal(kx, (N, C, H, W), jnp.float32)
    params = init_scse_params(kp, C)
    out = scse_forward(x, params)
    jax.block_until_ready(out)
    assert out.shape == (N, C, H, W), out.shape
    ref = scse_reference(x, params)
    assert jnp.allclose(out, ref, atol=1e-4, rtol=1e-4), float(
        jnp.max(jnp.abs(out - ref)))

    # 2) two-pass tiled fallback with a ragged pixel count (masked last tile)
    x2 = jax.random.normal(kx2, (1, 4, 18, 18), jnp.float32)
    out2 = scse_forward(x2, params, force_two_pass=True, tile_override=128)
    jax.block_until_ready(out2)
    ref2 = scse_reference(x2, params)
    assert jnp.allclose(out2, ref2, atol=1e-4, rtol=1e-4), float(
        jnp.max(jnp.abs(out2 - ref2)))

    # 3) bf16 I/O (f32 accumulation / gate math inside the kernel)
    xb = x.astype(jnp.bfloat16)
    outb = scse_forward(xb, params)
    jax.block_until_ready(outb)
    assert outb.dtype == jnp.bfloat16
    refb = scse_reference(xb, params)
    assert jnp.allclose(outb.astype(jnp.float32), refb, atol=5e-2, rtol=5e-2)

    # 4) larger channel count exercising the MXU sSE path (C >= 64)
    C2 = 64
    x3 = jax.random.normal(kx, (1, C2, 16, 16), jnp.float32)
    params2 = init_scse_params(kp2, C2)
    out3 = scse_forward(x3, params2)
    jax.block_until_ready(out3)
    ref3 = scse_reference(x3, params2)
    assert jnp.allclose(out3, ref3, atol=1e-4, rtol=1e-4), float(
        jnp.max(jnp.abs(out3 - ref3)))

    print("KERNEL_OK")
</pallas_src>

<mosaic_0001>
module attributes {stable_mosaic.version = 11 : i64} {
  func.func @_scse_fused_kernel(%arg0: i32, %arg1: memref<1x4x256xf32, #tpu.memory_space<vmem>>, %arg2: memref<2x4xf32, #tpu.memory_space<vmem>>, %arg3: memref<4x2xf32, #tpu.memory_space<vmem>>, %arg4: memref<4x1xf32, #tpu.memory_space<vmem>>, %arg5: memref<1x4x256xf32, #tpu.memory_space<vmem>>) attributes {dimension_semantics = [#tpu.dimension_semantics<parallel>], iteration_bounds = array<i64: 2>, scalar_prefetch = 0 : i64, scratch_operands = 0 : i64, tpu.core_type = #tpu.core_type<tc>, window_params = [{transform_indices = @transform_0, window_bounds = array<i64: 1, 4, 256>}, {pipeline_mode = #tpu.pipeline_mode<synchronous>, transform_indices = @transform_1, window_bounds = array<i64: 2, 4>}, {pipeline_mode = #tpu.pipeline_mode<synchronous>, transform_indices = @transform_2, window_bounds = array<i64: 4, 2>}, {pipeline_mode = #tpu.pipeline_mode<synchronous>, transform_indices = @transform_3, window_bounds = array<i64: 4, 1>}, {transform_indices = @transform_4, window_bounds = array<i64: 1, 4, 256>}]} {
    %c0 = arith.constant 0 : index
    %c0_0 = arith.constant 0 : index
    %c0_1 = arith.constant 0 : index
    %0 = vector.load %arg1[%c0, %c0_0, %c0_1] : memref<1x4x256xf32, #tpu.memory_space<vmem>>, vector<1x4x256xf32>
    %1 = vector.shape_cast %0 : vector<1x4x256xf32> to vector<4x256xf32>
    %cst = arith.constant dense<0.000000e+00> : vector<4xf32>
    %2 = vector.multi_reduction <add>, %1, %cst [1] : vector<4x256xf32> to vector<4xf32>
    %3 = vector.shape_cast %2 : vector<4xf32> to vector<4x1xf32>
    %cst_2 = arith.constant 3.906250e-03 : f32
    %4 = vector.broadcast %cst_2 : f32 to vector<4x1xf32>
    %5 = arith.mulf %3, %4 : vector<4x1xf32>
    %c0_3 = arith.constant 0 : index
    %c0_4 = arith.constant 0 : index
    %6 = vector.load %arg2[%c0_3, %c0_4] : memref<2x4xf32, #tpu.memory_space<vmem>>, vector<2x4xf32>
    %cst_5 = arith.constant dense<0.000000e+00> : vector<2x1xf32>
    %7 = tpu.matmul %6, %5, %cst_5 {dimension_numbers = #tpu.dot_dimension_numbers<[1], [0], [0], [1], [0, 0, 1, 1], [], []>} : vector<2x4xf32>, vector<4x1xf32>, vector<2x1xf32> -> vector<2x1xf32>
    %c0_6 = arith.constant 0 : index
    %c0_7 = arith.constant 0 : index
    %8 = vector.load %arg3[%c0_6, %c0_7] : memref<4x2xf32, #tpu.memory_space<vmem>>, vector<4x2xf32>
    %cst_8 = arith.constant dense<0.000000e+00> : vector<4x1xf32>
    %9 = tpu.matmul %8, %7, %cst_8 {dimension_numbers = #tpu.dot_dimension_numbers<[1], [0], [0], [1], [0, 0, 1, 1], [], []>} : vector<4x2xf32>, vector<2x1xf32>, vector<4x1xf32> -> vector<4x1xf32>
    %10 = arith.negf %9 : vector<4x1xf32>
    %11 = math.exp %10 : vector<4x1xf32>
    %cst_9 = arith.constant 1.000000e+00 : f32
    %12 = vector.broadcast %cst_9 : f32 to vector<4x1xf32>
    %13 = arith.addf %12, %11 : vector<4x1xf32>
    %14 = arith.divf %12, %13 : vector<4x1xf32>
    %c0_10 = arith.constant 0 : index
    %c0_11 = arith.constant 0 : index
    %15 = vector.load %arg4[%c0_10, %c0_11] : memref<4x1xf32, #tpu.memory_space<vmem>>, vector<4x1xf32>
    %16 = vector.broadcast %15 : vector<4x1xf32> to vector<4x256xf32>
    %17 = arith.mulf %1, %16 : vector<4x256xf32>
    %cst_12 = arith.constant dense<0.000000e+00> : vector<256xf32>
    %18 = vector.multi_reduction <add>, %17, %cst_12 [0] : vector<4x256xf32> to vector<256xf32>
    %19 = vector.shape_cast %18 : vector<256xf32> to vector<1x256xf32>
    %20 = arith.negf %19 : vector<1x256xf32>
    %21 = math.exp %20 : vector<1x256xf32>
    %cst_13 = arith.constant 1.000000e+00 : f32
    %22 = vector.broadcast %cst_13 : f32 to vector<1x256xf32>
    %23 = arith.addf %22, %21 : vector<1x256xf32>
    %24 = arith.divf %22, %23 : vector<1x256xf32>
    %25 = vector.broadcast %14 : vector<4x1xf32> to vector<4x256xf32>
    %26 = vector.broadcast %24 : vector<1x256xf32> to vector<4x256xf32>
    %27 = arith.addf %25, %26 : vector<4x256xf32>
    %28 = arith.mulf %1, %27 : vector<4x256xf32>
    %c0_14 = arith.constant 0 : index
    %c0_15 = arith.constant 0 : index
    %c0_16 = arith.constant 0 : index
    %29 = vector.load %arg5[%c0_14, %c0_15, %c0_16] : memref<1x4x256xf32, #tpu.memory_space<vmem>>, vector<1x4x256xf32>
    %30 = vector.shape_cast %29 : vector<1x4x256xf32> to vector<4x256xf32>
    %31 = vector.shape_cast %28 : vector<4x256xf32> to vector<1x4x256xf32>
    tpu.vector_store %arg5[%c0_14, %c0_15, %c0_16], %31 {strides = array<i32>} : memref<1x4x256xf32, #tpu.memory_space<vmem>>, vector<1x4x256xf32>,
    return
  }
  func.func @transform_0(%arg0: i32) -> (i32, i32, i32) {
    %c0_i32 = arith.constant 0 : i32
    %c0_i32_0 = arith.constant 0 : i32
    %c0_i32_1 = arith.constant 0 : i32
    return %arg0, %c0_i32, %c0_i32_0 : i32, i32, i32
  }
  func.func @transform_1(%arg0: i32) -> (i32, i32) {
    %c0_i32 = arith.constant 0 : i32
    %c0_i32_0 = arith.constant 0 : i32
    %c0_i32_1 = arith.constant 0 : i32
    return %c0_i32, %c0_i32_0 : i32, i32
  }
  func.func @transform_2(%arg0: i32) -> (i32, i32) {
    %c0_i32 = arith.constant 0 : i32
    %c0_i32_0 = arith.constant 0 : i32
    %c0_i32_1 = arith.constant 0 : i32
    return %c0_i32, %c0_i32_0 : i32, i32
  }
  func.func @transform_3(%arg0: i32) -> (i32, i32) {
    %c0_i32 = arith.constant 0 : i32
    %c0_i32_0 = arith.constant 0 : i32
    %c0_i32_1 = arith.constant 0 : i32
    return %c0_i32, %c0_i32_0 : i32, i32
  }
  func.func @transform_4(%arg0: i32) -> (i32, i32, i32) {
    %c0_i32 = arith.constant 0 : i32
    %c0_i32_0 = arith.constant 0 : i32
    %c0_i32_1 = arith.constant 0 : i32
    return %arg0, %c0_i32, %c0_i32_0 : i32, i32, i32
  }
}

</mosaic_0001>

<bundles_post_ra>
// kernel: scse_forward.1
= control target key start
LH: loop header
LB: loop body
LE: loop exit
PB: predicated region body
PF: predicated region fallthrough
CT: control target
= control target key end

     0   :  { %s581_s15 = smov 0   ;;  %s626_s0 = inlined_call_operand.vmem [shape: f32[2,4,256], index: 0, kind: input, shape index: {}]   ;;  %s627_s1 = inlined_call_operand.vmem [shape: f32[2,4], index: 1, kind: input, shape index: {}]   ;;  %s628_s2 = inlined_call_operand.vmem [shape: f32[4,2], index: 2, kind: input, shape index: {}]   ;;  %s629_s3 = inlined_call_operand.vmem [shape: f32[4,1], index: 3, kind: input, shape index: {}]   ;;  %s630_s4 = inlined_call_operand.vmem [shape: f32[2,4,256], index: 4, kind: output, shape index: {}]  }
   0x1 LB: > { %s483_s16 = sadd.s32 4294967295, %s550_s15   ;;  %p487_p0 = scmp.ge.s32.totalorder %s550_s15, 1  ;;  %s550_s15 = sphi %s581_s15, %s14_s15  }
   0x2   : > { %p162_p1 = scmp.lt.s32.totalorder %s550_s15, 3 }
   0x4   : > { %p163_p2 = pnand %p487_p0, %p162_p1 }
   0x5   : > { %p188_p3 = scmp.lt.s32.totalorder (!%p163_p2), %s483_s16, 1  ;;  %vm202_vm0 = vcmask (!%p163_p2), 1043456   ;;  %v552_v5 = vmov (!%p163_p2), 0.0   ;;  %vm553_vm1 = vmmov (!%p163_p2), 0   ;;  %v209_v8 = vld [vmem:[%s627_s1] sm:$0x3] (!%p163_p2)  ;;  %v380_v22 = vlaneseq (!%p163_p2) }
   0x6   : > { %166 = sbr.rel (%p163_p2) target bundleno = 753 (0x2f1), region = 36  ;;  %507 = vmatprep.subr.mxu0 (!%p163_p2), %v552_v5  ;;  %512 = vmatprep.subr.mxu1 (!%p163_p2), %v552_v5  ;;  %vm210_vm2 = vcmask (!%p163_p2), 31744   ;;  %v372_v9 = vld [vmem:[%s629_s3] sm:$0xf] (!%p163_p2)  ;;  %v554_v10 = vmov (!%p163_p2), 0   ;;  %vm292_vm3 = vcmask (!%p163_p2), 1041408  }
   0x7   : > { %509 = vmatprep.mubr.msk.f32.mxu0 (!%p163_p2), %vm553_vm1, %v552_v5  ;;  %514 = vmatprep.mubr.msk.f32.mxu1 (!%p163_p2), %vm553_vm1, %v552_v5  ;;  %v287_v11 = vld [vmem:[%s628_s2] sm:$0xf] (!%p163_p2)  ;;  %vm288_vm4 = vcmask (!%p163_p2), 15360   ;;  %v555_v20 = vmov (!%p163_p2), 839922192   ;;  %v381_v24 = vshrl.u32 (!%p163_p2), %v380_v22, 7 }
   0x8   : > { %529 = vset.pattern.permute.xlu0 (!%p163_p2), %v554_v10  ;;  %530 = vset.pattern.permute.xlu1 (!%p163_p2), %v554_v10  ;;  %v378_v21 = vunpack.c.l.s4 (!%p163_p2), %v555_v20 }
   0xa   : > { %v379_v23 = vunpack.c.0.s8 (!%p163_p2), %v378_v21 }
   0xc   : > { %v382_v25 = vsub.s32 (!%p163_p2), %v379_v23, %v381_v24 }
   0xd   : > { %s632_s16 = smov (!%p188_p3, %s483_s16), 1 }
   0xe   : > { %s501_s17 = sshll.u32 %s632_s16, 3 }
   0xf   : > { %s192_s20 = scalar_lea.vmem %s626_s0, %s501_s17  ;;  %s197_s29 = scalar_lea.vmem %s630_s4, %s501_s17 }
  0x10   : > { %v597_v0 = vld [vmem:[%s192_s20] sm:$0xff] }
  0x11   : > { %v200_v1 = vcombine.high %v597_v0, %v597_v0  ;;  %v203_v2 = vsel %vm202_vm0, %v597_v0, 0.0 }
  0x13   : > { %v204_v3 = vsel %vm202_vm0, %v200_v1, 0.0 }
  0x14   : > { %v205_v4 = vadd.f32 %v204_v3, %v203_v2 }
  0x16   : > { %206 = vadd.xlane.f32.xlu0 %v205_v4 }
  0x2c   : > { %375 = vperm.xlu0 %529, %v372_v9  }
  0xa3   : > { %v207_v6 = vpop.xlane.xlu0 %206 }
  0xa4   : > { %v208_v7 = vmul.f32 0.00390625, %v207_v6 }
  0xa6   : > { %508 = vmatpush3.msk.msra.mxu0 %vm202_vm0, %v208_v7 }
  0xa7   : > { %510 = vmatmul.mubr.msk.f32.vlgmr.msra.gmra.mrb[0].mxu0 %vm210_vm2, %v209_v8 }
  0xab   : > { %v376_v26 = vpop.permute.xlu0 %375 }
  0xac   : > { %v383_v27 = vrot.slane %v376_v26, %v382_v25 }
  0xae   : > { %v385_v28 = vmul.f32 %v383_v27, %v597_v0 }
  0xb0   : > { %v387_v29 = vcombine.high %v385_v28, %v385_v28  ;;  %v389_v30 = vsel %vm202_vm0, %v385_v28, 0.0 }
  0xb1   : > { %v390_v32 = vrot.slane %v389_v30, 4 }
  0xb2   : > { %v396_v31 = vsel %vm202_vm0, %v387_v29, 0.0 }
  0xb3   : > { %v397_v33 = vrot.slane %v396_v31, 4  ;;  %v391_v34 = vadd.f32 %v390_v32, %v389_v30 }
  0xb5   : > { %v398_v35 = vadd.f32 %v397_v33, %v396_v31  ;;  %v392_v36 = vrot.slane %v391_v34, 2 }
  0xb7   : > { %v399_v37 = vrot.slane %v398_v35, 2  ;;  %v393_v38 = vadd.f32 %v392_v36, %v391_v34 }
  0xb9   : > { %v400_v39 = vadd.f32 %v399_v37, %v398_v35  ;;  %v394_v40 = vrot.slane %v393_v38, 1 }
  0xbb   : > { %v401_v41 = vrot.slane %v400_v39, 1  ;;  %v395_v42 = vadd.f32 %v394_v40, %v393_v38 }
  0xbd   : > { %v402_v43 = vadd.f32 %v401_v41, %v400_v39  ;;  %v497_v44 = vmul.f32 -1.442695, %v395_v42 }
  0xbf   : > { %v498_v45 = vmul.f32 -1.442695, %v402_v43 }
 0x17a   : > { %v283_v12 = vpop.f32.mrb[0].mxu0 }
 0x17b   : > { %v511_v13 = vpop.f32.mrb[1].mxu0  ;;  %513 = vmatpush3.msk.msra.mxu1 %vm292_vm3, %v283_v12 }
 0x17c   : > { %515 = vmatmul.mubr.msk.f32.vlgmr.msra.gmra.mrb[0].mxu1 %vm288_vm4, %v287_v11 }
 0x24f   : > { %v362_v14 = vpop.f32.mrb[0].mxu1 }
 0x250   : > { %v496_v15 = vmul.f32 -1.442695, %v362_v14  ;;  %v516_v16 = vpop.f32.mrb[1].mxu1 }
 0x252   : > { %532 = vpow2.f32 %v496_v15 }
 0x25c   : > { %v533_v17 = vpop.eup %532 }
 0x25d   : > { %v369_v18 = vadd.f32 1.0, %v533_v17 }
 0x25f   : > { %534 = vrcp.f32 %v369_v18 }
 0x260   : > { %536 = vpow2.f32 %v497_v44 }
 0x261   : > { %538 = vpow2.f32 %v498_v45 }
 0x269   : > { %v535_v19 = vpop.eup %534 }
 0x26a   : > { %417 = vperm.xlu1 %530, %v535_v19   ;;  %v537_v46 = vpop.eup %536 }
 0x26b   : > { %v539_v47 = vpop.eup %538  ;;  %v409_v48 = vadd.f32 1.0, %v537_v46 }
 0x26c   : > { %v410_v49 = vadd.f32 1.0, %v539_v47 }
 0x26d   : > { %540 = vrcp.f32 %v409_v48 }
 0x26e   : > { %542 = vrcp.f32 %v410_v49 }
 0x277   : > { %v541_v50 = vpop.eup %540 }
 0x278   : > { %v543_v51 = vpop.eup %542 }
 0x2e9   : > { %v418_v52 = vpop.permute.xlu1 %417 }
 0x2ea   : > { %v420_v53 = vadd.f32 %v541_v50, %v418_v52  ;;  %v421_v54 = vadd.f32 %v543_v51, %v418_v52 }
 0x2ec   : > { %v424_v55 = vcombine.low %v420_v53, %v421_v54 }
 0x2ee   : > { %v426_v56 = vmul.f32 %v424_v55, %v597_v0 }
 0x2f0   : > { %427 = vst [vmem:[%s197_s29] sm:$0xff] %v426_v56 }
 0x2f1 PF: > { %s14_s15 = sadd.s32 1, %s550_s15  }
 0x2f2   : > { %p11_p4 = scmp.ge.s32.totalorder %s14_s15, 4  }
 0x2f4   :  { %13 = sbr.rel (!%p11_p4) target bundleno = 1 (0x1), region = 66 }

</bundles_post_ra>
